<compile_context>
chip_gen: v6e
topology: v6e:2x2x1
jax: 0.10.0
libtpu: 0.0.40
codegen_flags: <defaults>
</compile_context>

<pallas_src>
import jax
import jax.numpy as jnp
from jax.experimental import pallas as pl
from jax.experimental.pallas import tpu as pltpu


def _make_focal_kernel(gamma, alpha_vec, C, HW, tile_hw):
    use_alpha = alpha_vec is not None
    ragged = (HW % tile_hw) != 0

    def kernel(x_ref, t_ref, part_ref, acc_ref):
        j = pl.program_id(1)

        @pl.when(j == 0)
        def _init():
            acc_ref[...] = jnp.zeros_like(acc_ref)

        x = x_ref[0].astype(jnp.float32)   # (C, T): classes on sublanes, HW on lanes
        t = t_ref[0]                       # (1, T) int32 targets

        # log-softmax over classes + target gather + alpha lookup, fully
        # unrolled over the small static class axis (pure VPU/EUP work).
        x0 = x[0:1, :]
        m = x0
        for c in range(1, C):
            m = jnp.maximum(m, x[c:c + 1, :])

        s = jnp.exp(x0 - m)
        logit_t = jnp.where(t == 0, x0, 0.0)
        if use_alpha:
            at = jnp.where(t == 0, alpha_vec[0], 0.0)
        for c in range(1, C):
            xc = x[c:c + 1, :]
            s = s + jnp.exp(xc - m)
            sel = t == c
            logit_t = jnp.where(sel, xc, logit_t)
            if use_alpha:
                at = jnp.where(sel, alpha_vec[c], at)

        logpt = logit_t - (jnp.log(s) + m)          # (1, T)
        pt = jnp.exp(logpt)                         # pt from pre-alpha logpt (matches PyTorch)
        if use_alpha:
            logpt = logpt * at

        # focal weight; gamma is a compile-time Python constant
        if gamma == 0.0:
            loss = -logpt
        else:
            omp = 1.0 - pt
            gi = int(gamma)
            if float(gamma) == float(gi) and 1 <= gi <= 8:
                w = omp
                for _ in range(gi - 1):
                    w = w * omp
            else:
                w = omp ** gamma
            loss = -(w * logpt)

        if ragged:
            col = j * tile_hw + jax.lax.broadcasted_iota(jnp.int32, loss.shape, 1)
            loss = jnp.where(col < HW, loss, 0.0)

        acc_ref[...] += loss                        # lane-wise VPU add, no per-step XLU

        @pl.when(j == pl.num_programs(1) - 1)
        def _finish():
            lane = jax.lax.broadcasted_iota(jnp.int32, part_ref.shape, 2)
            part_ref[...] = jnp.where(lane == 0, jnp.sum(acc_ref[...]), 0.0)

    return kernel


def _pick_tile_hw(C, HW, x_itemsize):
    """Largest lane tile (multiple of 128) whose double-buffered footprint
    stays safe on every generation (v7x has only 64 MiB physical VMEM)."""
    if HW <= 256:
        return HW
    target_cols = max(128, (4 << 20) // max(1, C * x_itemsize))   # ~4 MiB logits tile
    tile = min(target_cols, HW)
    tile = max(128, (tile // 128) * 128)

    def footprint(t):
        # double-buffered logits + targets, plus the f32 accumulator
        return 2 * t * (C * x_itemsize + 4) + 4 * t

    while tile > 128 and footprint(tile) > (16 << 20):
        tile = max(128, ((tile // 2) // 128) * 128)
    return tile


def focal_loss(logits_nchw, target_nchw, *, gamma=0.0, alpha=None,
               size_average=True, tile_hw=None):
    """Forward pass of FocalLoss for (N, C, H, W) logits, (N, H, W) int targets."""
    N, C, H, W = logits_nchw.shape
    HW = H * W
    M = N * HW

    # Native layout: reshapes only, no transpose / extra HBM pass.
    x3d = logits_nchw.reshape(N, C, HW)
    t3d = target_nchw.reshape(N, 1, HW).astype(jnp.int32)

    # alpha handling, same semantics as the PyTorch module (baked in at trace time).
    if alpha is None:
        alpha_vec = None
    elif isinstance(alpha, (float, int)):
        alpha_vec = [float(alpha), 1.0 - float(alpha)]   # module's 2-class table
    else:
        alpha_vec = [float(a) for a in alpha]
    if alpha_vec is not None and len(alpha_vec) < C:
        # PyTorch would raise on an out-of-range gather; pad with 1.0 so the
        # kernel stays well-defined for every class id.
        alpha_vec = alpha_vec + [1.0] * (C - len(alpha_vec))
    if alpha_vec is not None:
        alpha_vec = tuple(alpha_vec)

    x_itemsize = jnp.dtype(x3d.dtype).itemsize
    if tile_hw is None:
        tile_hw = _pick_tile_hw(C, HW, x_itemsize)
    tile_hw = int(tile_hw)
    if tile_hw >= HW:
        tile_hw = HW
    else:
        tile_hw = max(128, (tile_hw // 128) * 128)
    n_hw_tiles = pl.cdiv(HW, tile_hw)

    kernel = _make_focal_kernel(float(gamma), alpha_vec, C, HW, tile_hw)

    vmem_needed = (2 * tile_hw * (C * x_itemsize + 4)   # double-buffered inputs
                   + 4 * tile_hw                        # f32 accumulator scratch
                   + 2 * 128 * 4)                       # output partials
    vmem_limit = int(min(40 << 20, max(vmem_needed + (8 << 20), 16 << 20)))

    partials = pl.pallas_call(
        kernel,
        out_shape=jax.ShapeDtypeStruct((N, 1, 128), jnp.float32),
        grid_spec=pltpu.PrefetchScalarGridSpec(
            num_scalar_prefetch=0,
            grid=(N, n_hw_tiles),
            in_specs=[
                pl.BlockSpec((1, C, tile_hw), lambda n, j: (n, 0, j)),
                pl.BlockSpec((1, 1, tile_hw), lambda n, j: (n, 0, j)),
            ],
            out_specs=pl.BlockSpec((1, 1, 128), lambda n, j: (n, 0, 0)),
            scratch_shapes=[pltpu.VMEM((1, tile_hw), jnp.float32)],
        ),
        compiler_params=pltpu.CompilerParams(
            dimension_semantics=("parallel", "arbitrary"),
            vmem_limit_bytes=vmem_limit),
    )(x3d, t3d)

    total = jnp.sum(partials)
    if size_average:
        return total / jnp.float32(M)
    return total


def _reference_focal_loss(logits_nchw, target_nchw, gamma, alpha, size_average):
    N, C, H, W = logits_nchw.shape
    x = jnp.transpose(logits_nchw, (0, 2, 3, 1)).reshape(-1, C).astype(jnp.float32)
    t = target_nchw.reshape(-1).astype(jnp.int32)
    logp = jax.nn.log_softmax(x, axis=-1)
    logpt = jnp.take_along_axis(logp, t[:, None], axis=1)[:, 0]
    pt = jnp.exp(logpt)
    if alpha is not None:
        if isinstance(alpha, (float, int)):
            a = jnp.array([float(alpha), 1.0 - float(alpha)], dtype=jnp.float32)
        else:
            a = jnp.asarray(alpha, dtype=jnp.float32)
        logpt = logpt * a[t]
    loss = -1.0 * (1.0 - pt) ** gamma * logpt
    return loss.mean() if size_average else loss.sum()


if __name__ == "__main__":
    key = jax.random.PRNGKey(0)

    # Case 1: list alpha, gamma=2, mean reduction (matches the module demo).
    k1, k2, key = jax.random.split(key, 3)
    N, C, H, W = 2, 4, 16, 16
    logits = jax.random.normal(k1, (N, C, H, W), dtype=jnp.float32)
    target = jax.random.randint(k2, (N, H, W), 0, C, dtype=jnp.int32)
    out = focal_loss(logits, target, gamma=2.0, alpha=[0.1, 0.2, 0.3, 0.4],
                     size_average=True)
    out = jax.block_until_ready(out)
    ref = _reference_focal_loss(logits, target, 2.0, [0.1, 0.2, 0.3, 0.4], True)
    assert jnp.allclose(out, ref, rtol=1e-5, atol=1e-5), (out, ref)

    # Case 2: no alpha, gamma=0, sum reduction, ragged last tile (HW=384, tile=256).
    k1, k2, key = jax.random.split(key, 3)
    N, C, H, W = 1, 3, 16, 24
    logits = jax.random.normal(k1, (N, C, H, W), dtype=jnp.float32)
    target = jax.random.randint(k2, (N, H, W), 0, C, dtype=jnp.int32)
    out = focal_loss(logits, target, gamma=0.0, alpha=None,
                     size_average=False, tile_hw=256)
    out = jax.block_until_ready(out)
    ref = _reference_focal_loss(logits, target, 0.0, None, False)
    assert jnp.allclose(out, ref, rtol=1e-5, atol=1e-4), (out, ref)

    # Case 3: scalar alpha (2-class table), integer gamma=1.
    k1, k2, key = jax.random.split(key, 3)
    N, C, H, W = 2, 2, 8, 8
    logits = jax.random.normal(k1, (N, C, H, W), dtype=jnp.float32)
    target = jax.random.randint(k2, (N, H, W), 0, C, dtype=jnp.int32)
    out = focal_loss(logits, target, gamma=1.0, alpha=0.25, size_average=True)
    out = jax.block_until_ready(out)
    ref = _reference_focal_loss(logits, target, 1.0, 0.25, True)
    assert jnp.allclose(out, ref, rtol=1e-5, atol=1e-5), (out, ref)

    print("KERNEL_OK")
</pallas_src>

<mosaic_0001>
module attributes {stable_mosaic.version = 11 : i64} {
  func.func @kernel(%arg0: i32, %arg1: i32, %arg2: memref<1x4x256xf32, #tpu.memory_space<vmem>>, %arg3: memref<1x1x256xi32, #tpu.memory_space<vmem>>, %arg4: memref<1x1x128xf32, #tpu.memory_space<vmem>>, %arg5: memref<1x256xf32, #tpu.memory_space<vmem>>) attributes {dimension_semantics = [#tpu.dimension_semantics<parallel>, #tpu.dimension_semantics<arbitrary>], iteration_bounds = array<i64: 2, 1>, scalar_prefetch = 0 : i64, scratch_operands = 1 : i64, tpu.core_type = #tpu.core_type<tc>, window_params = [{transform_indices = @transform_0, window_bounds = array<i64: 1, 4, 256>}, {transform_indices = @transform_1, window_bounds = array<i64: 1, 1, 256>}, {transform_indices = @transform_2, window_bounds = array<i64: 1, 1, 128>}]} {
    %c0_i32 = arith.constant 0 : i32
    %0 = arith.cmpi eq, %arg1, %c0_i32 : i32
    %1 = arith.extui %0 : i1 to i32
    %c0_i32_0 = arith.constant 0 : i32
    %2 = arith.cmpi ne, %1, %c0_i32_0 : i32
    scf.if %2 {
      %cst_21 = arith.constant 0.000000e+00 : f32
      %69 = vector.broadcast %cst_21 : f32 to vector<1x256xf32>
      %c0_22 = arith.constant 0 : index
      %c0_23 = arith.constant 0 : index
      %70 = vector.load %arg5[%c0_22, %c0_23] : memref<1x256xf32, #tpu.memory_space<vmem>>, vector<1x256xf32>
      tpu.vector_store %arg5[%c0_22, %c0_23], %69 {strides = array<i32>} : memref<1x256xf32, #tpu.memory_space<vmem>>, vector<1x256xf32>,
    } else {
    }
    %c0 = arith.constant 0 : index
    %c0_1 = arith.constant 0 : index
    %c0_2 = arith.constant 0 : index
    %3 = vector.load %arg2[%c0, %c0_1, %c0_2] : memref<1x4x256xf32, #tpu.memory_space<vmem>>, vector<1x4x256xf32>
    %4 = vector.shape_cast %3 : vector<1x4x256xf32> to vector<4x256xf32>
    %c0_3 = arith.constant 0 : index
    %c0_4 = arith.constant 0 : index
    %c0_5 = arith.constant 0 : index
    %5 = vector.load %arg3[%c0_3, %c0_4, %c0_5] : memref<1x1x256xi32, #tpu.memory_space<vmem>>, vector<1x1x256xi32>
    %6 = vector.shape_cast %5 : vector<1x1x256xi32> to vector<1x256xi32>
    %7 = vector.extract_strided_slice %4 {offsets = [0, 0], sizes = [1, 256], strides = [1, 1]} : vector<4x256xf32> to vector<1x256xf32>
    %8 = vector.extract_strided_slice %4 {offsets = [1, 0], sizes = [1, 256], strides = [1, 1]} : vector<4x256xf32> to vector<1x256xf32>
    %9 = arith.maximumf %7, %8 : vector<1x256xf32>
    %10 = vector.extract_strided_slice %4 {offsets = [2, 0], sizes = [1, 256], strides = [1, 1]} : vector<4x256xf32> to vector<1x256xf32>
    %11 = arith.maximumf %9, %10 : vector<1x256xf32>
    %12 = vector.extract_strided_slice %4 {offsets = [3, 0], sizes = [1, 256], strides = [1, 1]} : vector<4x256xf32> to vector<1x256xf32>
    %13 = arith.maximumf %11, %12 : vector<1x256xf32>
    %14 = arith.subf %7, %13 : vector<1x256xf32>
    %15 = math.exp %14 : vector<1x256xf32>
    %c0_i32_6 = arith.constant 0 : i32
    %16 = vector.broadcast %c0_i32_6 : i32 to vector<1x256xi32>
    %17 = arith.cmpi eq, %6, %16 : vector<1x256xi32>
    %cst = arith.constant 0.000000e+00 : f32
    %18 = vector.broadcast %cst : f32 to vector<1x256xf32>
    %19 = arith.select %17, %7, %18 : vector<1x256xi1>, vector<1x256xf32>
    %c0_i32_7 = arith.constant 0 : i32
    %20 = vector.broadcast %c0_i32_7 : i32 to vector<1x256xi32>
    %21 = arith.cmpi eq, %6, %20 : vector<1x256xi32>
    %cst_8 = arith.constant 1.000000e-01 : f32
    %cst_9 = arith.constant 0.000000e+00 : f32
    %22 = vector.broadcast %cst_8 : f32 to vector<1x256xf32>
    %23 = vector.broadcast %cst_9 : f32 to vector<1x256xf32>
    %24 = arith.select %21, %22, %23 : vector<1x256xi1>, vector<1x256xf32>
    %25 = vector.extract_strided_slice %4 {offsets = [1, 0], sizes = [1, 256], strides = [1, 1]} : vector<4x256xf32> to vector<1x256xf32>
    %26 = arith.subf %25, %13 : vector<1x256xf32>
    %27 = math.exp %26 : vector<1x256xf32>
    %28 = arith.addf %15, %27 : vector<1x256xf32>
    %c1_i32 = arith.constant 1 : i32
    %29 = vector.broadcast %c1_i32 : i32 to vector<1x256xi32>
    %30 = arith.cmpi eq, %6, %29 : vector<1x256xi32>
    %31 = arith.select %30, %25, %19 : vector<1x256xi1>, vector<1x256xf32>
    %cst_10 = arith.constant 2.000000e-01 : f32
    %32 = vector.broadcast %cst_10 : f32 to vector<1x256xf32>
    %33 = arith.select %30, %32, %24 : vector<1x256xi1>, vector<1x256xf32>
    %34 = vector.extract_strided_slice %4 {offsets = [2, 0], sizes = [1, 256], strides = [1, 1]} : vector<4x256xf32> to vector<1x256xf32>
    %35 = arith.subf %34, %13 : vector<1x256xf32>
    %36 = math.exp %35 : vector<1x256xf32>
    %37 = arith.addf %28, %36 : vector<1x256xf32>
    %c2_i32 = arith.constant 2 : i32
    %38 = vector.broadcast %c2_i32 : i32 to vector<1x256xi32>
    %39 = arith.cmpi eq, %6, %38 : vector<1x256xi32>
    %40 = arith.select %39, %34, %31 : vector<1x256xi1>, vector<1x256xf32>
    %cst_11 = arith.constant 3.000000e-01 : f32
    %41 = vector.broadcast %cst_11 : f32 to vector<1x256xf32>
    %42 = arith.select %39, %41, %33 : vector<1x256xi1>, vector<1x256xf32>
    %43 = vector.extract_strided_slice %4 {offsets = [3, 0], sizes = [1, 256], strides = [1, 1]} : vector<4x256xf32> to vector<1x256xf32>
    %44 = arith.subf %43, %13 : vector<1x256xf32>
    %45 = math.exp %44 : vector<1x256xf32>
    %46 = arith.addf %37, %45 : vector<1x256xf32>
    %c3_i32 = arith.constant 3 : i32
    %47 = vector.broadcast %c3_i32 : i32 to vector<1x256xi32>
    %48 = arith.cmpi eq, %6, %47 : vector<1x256xi32>
    %49 = arith.select %48, %43, %40 : vector<1x256xi1>, vector<1x256xf32>
    %cst_12 = arith.constant 4.000000e-01 : f32
    %50 = vector.broadcast %cst_12 : f32 to vector<1x256xf32>
    %51 = arith.select %48, %50, %42 : vector<1x256xi1>, vector<1x256xf32>
    %52 = math.log %46 : vector<1x256xf32>
    %53 = arith.addf %52, %13 : vector<1x256xf32>
    %54 = arith.subf %49, %53 : vector<1x256xf32>
    %55 = math.exp %54 : vector<1x256xf32>
    %56 = arith.mulf %54, %51 : vector<1x256xf32>
    %cst_13 = arith.constant 1.000000e+00 : f32
    %57 = vector.broadcast %cst_13 : f32 to vector<1x256xf32>
    %58 = arith.subf %57, %55 : vector<1x256xf32>
    %59 = arith.mulf %58, %58 : vector<1x256xf32>
    %60 = arith.mulf %59, %56 : vector<1x256xf32>
    %cst_14 = arith.constant 0.000000e+00 : f32
    %61 = vector.broadcast %cst_14 : f32 to vector<1x256xf32>
    %62 = arith.subf %61, %60 : vector<1x256xf32>
    %c0_15 = arith.constant 0 : index
    %c0_16 = arith.constant 0 : index
    %63 = vector.load %arg5[%c0_15, %c0_16] : memref<1x256xf32, #tpu.memory_space<vmem>>, vector<1x256xf32>
    %64 = arith.addf %63, %62 : vector<1x256xf32>
    %c0_17 = arith.constant 0 : index
    %c0_18 = arith.constant 0 : index
    %65 = vector.load %arg5[%c0_17, %c0_18] : memref<1x256xf32, #tpu.memory_space<vmem>>, vector<1x256xf32>
    tpu.vector_store %arg5[%c0_17, %c0_18], %64 {strides = array<i32>} : memref<1x256xf32, #tpu.memory_space<vmem>>, vector<1x256xf32>,
    %c0_i32_19 = arith.constant 0 : i32
    %66 = arith.cmpi eq, %arg1, %c0_i32_19 : i32
    %67 = arith.extui %66 : i1 to i32
    %c0_i32_20 = arith.constant 0 : i32
    %68 = arith.cmpi ne, %67, %c0_i32_20 : i32
    scf.if %68 {
      %69 = tpu.iota {dimensions = array<i32: 2>} : vector<1x1x128xi32>
      %c0_i32_21 = arith.constant 0 : i32
      %70 = vector.broadcast %c0_i32_21 : i32 to vector<1x1x128xi32>
      %71 = arith.cmpi eq, %69, %70 : vector<1x1x128xi32>
      %c0_22 = arith.constant 0 : index
      %c0_23 = arith.constant 0 : index
      %72 = vector.load %arg5[%c0_22, %c0_23] : memref<1x256xf32, #tpu.memory_space<vmem>>, vector<1x256xf32>
      %73 = vector.shape_cast %72 : vector<1x256xf32> to vector<1x1x256xf32>
      %cst_24 = arith.constant dense<0.000000e+00> : vector<1xf32>
      %74 = vector.multi_reduction <add>, %73, %cst_24 [1, 2] : vector<1x1x256xf32> to vector<1xf32>
      %75 = vector.shape_cast %74 : vector<1xf32> to vector<1x1x1xf32>
      %76 = vector.extract %75[0, 0, 0] : f32 from vector<1x1x1xf32>
      %cst_25 = arith.constant 0.000000e+00 : f32
      %77 = vector.broadcast %76 : f32 to vector<1x1x128xf32>
      %78 = vector.broadcast %cst_25 : f32 to vector<1x1x128xf32>
      %79 = arith.select %71, %77, %78 : vector<1x1x128xi1>, vector<1x1x128xf32>
      %c0_26 = arith.constant 0 : index
      %c0_27 = arith.constant 0 : index
      %c0_28 = arith.constant 0 : index
      %80 = vector.load %arg4[%c0_26, %c0_27, %c0_28] : memref<1x1x128xf32, #tpu.memory_space<vmem>>, vector<1x1x128xf32>
      tpu.vector_store %arg4[%c0_26, %c0_27, %c0_28], %79 {strides = array<i32>} : memref<1x1x128xf32, #tpu.memory_space<vmem>>, vector<1x1x128xf32>,
    } else {
    }
    return
  }
  func.func @transform_0(%arg0: i32, %arg1: i32) -> (i32, i32, i32) {
    %c0_i32 = arith.constant 0 : i32
    %c0_i32_0 = arith.constant 0 : i32
    return %arg0, %c0_i32, %arg1 : i32, i32, i32
  }
  func.func @transform_1(%arg0: i32, %arg1: i32) -> (i32, i32, i32) {
    %c0_i32 = arith.constant 0 : i32
    %c0_i32_0 = arith.constant 0 : i32
    return %arg0, %c0_i32, %arg1 : i32, i32, i32
  }
  func.func @transform_2(%arg0: i32, %arg1: i32) -> (i32, i32, i32) {
    %c0_i32 = arith.constant 0 : i32
    %c0_i32_0 = arith.constant 0 : i32
    %c0_i32_1 = arith.constant 0 : i32
    return %arg0, %c0_i32, %c0_i32_0 : i32, i32, i32
  }
}

</mosaic_0001>

<bundles_post_ra>
// kernel: tpu_custom_call.1
= control target key start
LH: loop header
LB: loop body
LE: loop exit
PB: predicated region body
PF: predicated region fallthrough
CT: control target
= control target key end

     0   :  { %7 = vsyncpa [#allocation4], 0  ;;  %s961_s0 = inlined_call_operand.hbm [shape: f32[2,4,256], index: 0, kind: input, shape index: {}]   ;;  %s962_s1 = inlined_call_operand.hbm [shape: s32[2,1,256], index: 1, kind: input, shape index: {}]   ;;  %s963_s2 = inlined_call_operand.hbm [shape: f32[2,1,128], index: 2, kind: output, shape index: {}]  }
   0x1   :  { %9 = vsyncpa [#allocation4 + $0x1], 0 }
   0x2   :  { %10 = vsyncpa [#allocation7], 0 }
   0x3   :  { %12 = vsyncpa [#allocation7 + $0x1], 0 }
   0x4   :  { %13 = vsyncpa [#allocation5], 0 }
   0x5   :  { %15 = vsyncpa [#allocation5 + $0x1], 0  ;;  %s770_s9 = smov 0   ;;  %s772_s10 = smov 0  }
   0x6   :  { %s774_s11 = smov 0   ;;  %s776_s12 = smov 0  }
   0x7   :  { %s778_s13 = smov 0   ;;  %s780_s14 = smov 0  }
   0x8 LB: > { %s501_s15 = sadd.s32 4294967295, %s748_s14   ;;  %s502_s16 = sadd.s32 4294967294, %s748_s14   ;;  %s748_s14 = sphi %s780_s14, %s21_s14   ;;  %s744_s13 = sphi %s778_s13, %s977_s13   ;;  %s740_s12 = sphi %s776_s12, %s976_s12   ;;  %s736_s11 = sphi %s774_s11, %s975_s11   ;;  %s732_s10 = sphi %s772_s10, %s974_s10   ;;  %s728_s9 = sphi %s770_s9, %s973_s9  }
   0x9   : > { %s33_s17 = sadd.s32 1, %s744_s13  ;;  %s42_s18 = sadd.s32 1, %s736_s11 }
   0xa   : > { %p35_p0 = scmp.ge.s32.totalorder %s33_s17, 2  ;;  %p49_p1 = scmp.ne.s32.totalorder %s736_s11, %s732_s10 }
   0xb   : > { %p50_p2 = scmp.eq.s32.totalorder %s748_s14, 0  ;;  %p55_p3 = scmp.ne.s32.totalorder %s732_s10, %s728_s9 }
   0xc   : > { %s979_s17 = smov (%p35_p0, %s33_s17), 0  ;;  %p56_p5 = scmp.eq.s32.totalorder %s501_s15, 0 }
   0xd   : > { %p811_p4 = por %p50_p2, %p49_p1  ;;  %s37_s20 = ssub.s32 %s744_s13, %s979_s17 }
   0xe   : > { %p107_p6 = scmp.eq.s32.totalorder %s501_s15, 1  ;;  %p40_p7 = scmp.eq.s32.totalorder %s37_s20, 0 }
   0xf   : > { %p817_p8 = por %p56_p5, %p55_p3  ;;  %p113_p10 = scmp.eq.s32.totalorder %s502_s16, 1 }
  0x10   : > { %p821_p9 = por %p107_p6, %p49_p1  ;;  %p544_p13 = scmp.lt.s32.totalorder %s748_s14, 2 }
  0x11   : > { %s826_s23 = scalar_select %p40_p7, %s736_s11, %s42_s18  }
  0x12   : > { %p828_p11 = por %p113_p10, %p55_p3  ;;  %s835_s25 = sand.u32 1, %s736_s11  }
  0x13   : > { %s505_s26 = sshll.u32 %s835_s25, 3  ;;  %s523_s27 = sshll.u32 %s744_s13, 7 }
  0x14   : > { %s145_s30 = scalar_lea.hbm %s961_s0, %s523_s27  ;;  %s137_s3 = scalar_lea.vmem [#allocation3], %s505_s26 }
  0x15   : > { %s147_s4 = sshll.u32 %s137_s3, 4  ;;  %p844_p0 = pnand %p544_p13, %p811_p4  ;;  %s148_s4 = int_to_ptr.vmem [resolvable:$true] %s147_s4 }
  0x16   : > { %p511_p1 = scmp.ge.s32.totalorder %s748_s14, 1  ;;  %p173_p2 = scmp.lt.s32.totalorder %s748_s14, 3 }
  0x17   : > { %s134_s6 = scalar_lea.sflag [#allocation4], %s835_s25  ;;  %p610_p3 = pneg %p844_p0 }
  0x18   : > { %s621_s7 = scalar_lea.vmem %s148_s4, 128  ;;  %s750_s8 = smov [#allocation3]  }
  0x19   : > { %p622_p5 = scmp.ne.s32.totalorder %s148_s4, %s621_s7  ;;  %s626_s15 = sshll.u32 %s750_s8, 4  ;;  %s627_s15 = int_to_ptr.vmem [resolvable:$false] %s626_s15 }
  0x1a   : > { %s628_s16 = scalar_lea.vmem %s627_s15, 256  ;;  %p629_p4 = scmp.lt.s32.totalorder %s148_s4, %s627_s15 }
  0x1b   : > { %p624_p6 = pnand %p622_p5, %p610_p3  ;;  %p630_p10 = scmp.lt.s32.totalorder %s628_s16, %s621_s7 }
  0x1d   : > { %p625_p7 = pneg %p624_p6  ;;  %p631_p13 = por %p630_p10, %p629_p4 }
  0x1f   : > { %p632_p12 = pnand %p631_p13, %p625_p7 }
  0x21   : > { %635 = shalt.err (!%p632_p12)
}
  0x22   : > { %536 = dma.hbm_to_vmem [thread:$0]  (!%p844_p0), %s145_s30, 128, %s148_s4, %s134_s6  }
  0x23   : > { %p862_p5 = pnand %p511_p1, %p173_p2  ;;  %s508_s19 = sshll.u32 %s835_s25, 1 }
  0x24   : > { %s524_s20 = sshll.u32 %s744_s13, 5  ;;  %s158_s29 = scalar_lea.vmem [#allocation6], %s508_s19 }
  0x25   : > { %s166_s28 = scalar_lea.hbm %s962_s1, %s524_s20  ;;  %s168_s3 = sshll.u32 %s158_s29, 4  ;;  %s169_s3 = int_to_ptr.vmem [resolvable:$true] %s168_s3 }
  0x26   : > { %s155_s7 = scalar_lea.sflag [#allocation7], %s835_s25  ;;  %s649_s8 = scalar_lea.vmem %s169_s3, 32 }
  0x27   : > { %p650_p12 = scmp.ne.s32.totalorder %s169_s3, %s649_s8  ;;  %s751_s30 = smov [#allocation6]  }
  0x28   : > { %s654_s4 = sshll.u32 %s751_s30, 4  ;;  %s655_s4 = int_to_ptr.vmem [resolvable:$false] %s654_s4 }
  0x29   : > { %p652_p6 = pnand %p650_p12, %p610_p3  ;;  %s656_s6 = scalar_lea.vmem %s655_s4, 64 }
  0x2a   : > { %p657_p1 = scmp.lt.s32.totalorder %s169_s3, %s655_s4  ;;  %p658_p2 = scmp.lt.s32.totalorder %s656_s6, %s649_s8 }
  0x2b   : > { %p653_p7 = pneg %p652_p6 }
  0x2c   : > { %p659_p4 = por %p658_p2, %p657_p1 }
  0x2e   : > { %p660_p10 = pnand %p659_p4, %p653_p7 }
  0x30   : > { %663 = shalt.err (!%p660_p10)
}
  0x31   : > { %539 = dma.hbm_to_vmem [thread:$0]  (!%p844_p0), %s166_s28, 32, %s169_s3, %s155_s7  }
  0x32   : > { %177 = sbr.rel (%p862_p5) target bundleno = 374 (0x176), region = 28  ;;  %s880_s25 = sand.u32 (!%p862_p5), 1, %s732_s10  }
  0x33   : > { %s512_s15 = sshll.u32 (!%p862_p5), %s880_s25, 3  ;;  %s180_s16 = scalar_lea.sflag (!%p862_p5), [#allocation4], %s880_s25 }
  0x34   : > { %s183_s19 = scalar_lea.vmem (!%p862_p5), [#allocation3], %s512_s15 }
  0x37   : > { %715 = dma.done.wait (%p817_p8), %s180_s16, 128  }
  0x38   : > { %717 = vsyncadd (%p817_p8), %s180_s16, 4294967168  ;;  %s513_s5 = sshll.u32 %s880_s25, 1  ;;  %s189_s18 = scalar_lea.sflag [#allocation7], %s880_s25 }
  0x39   : > { %s890_s20 = scalar_lea.vmem [#allocation6], %s513_s5 }
  0x3a   : > { %719 = dma.done.wait (%p817_p8), %s189_s18, 32  }
  0x3b   : > { %721 = vsyncadd (%p817_p8), %s189_s18, 4294967264  ;;  %v223_v0 = vlaneseq  ;;  %v752_v2 = vmov 0.0   ;;  %v228_v3 = vld [vmem:[%s183_s19] sm:$0xff]  ;;  %v753_v21 = vmov 1966171168   ;;  %vm369_vm5 = vcmask 1040384  }
  0x3c   : > { %v514_v4 = vrot.slane %v228_v3, 9  ;;  %v515_v5 = vrot.slane %v228_v3, 10  ;;  %v516_v7 = vrot.slane %v228_v3, 11  ;;  %v248_v22 = vunpack.c.l.s4 %v753_v21  ;;  %v229_v37 = vld [vmem:[%s890_s20] sm:$0x3]  ;;  %s520_s21 = sshll.u32 %s740_s12, 4 }
  0x3d   : > { %vm897_vm0 = vcmp.lt.s32.totalorder %v223_v0, 256  ;;  %v251_v29 = vshrl.u32 %v223_v0, 7  ;;  %vm246_vm1 = vcmp.eq.s32.totalorder %v229_v37, 0  ;;  %vm275_vm2 = vcmp.eq.s32.totalorder %v229_v37, 1  ;;  %s216_s26 = scalar_lea.vmem [#allocation8], %s880_s25  ;;  %s919_s7 = scalar_lea.hbm %s963_s2, %s520_s21 }
  0x3e   : > { %227 = vst.msk [vmem:[#allocation2] sm:$0x3] %vm897_vm0, %v752_v2  ;;  %v234_v6 = vmax.f32 %v228_v3, %v514_v4  ;;  %v249_v28 = vunpack.c.0.s8 %v248_v22  ;;  %vm297_vm3 = vcmp.eq.s32.totalorder %v229_v37, 2  ;;  %vm312_vm4 = vcmp.eq.s32.totalorder %v229_v37, 3  ;;  %s398_s27 = sshll.u32 %s216_s26, 4  ;;  %s386_s8 = scalar_lea.sflag [#allocation5], %s880_s25  ;;  %s399_s27 = int_to_ptr.vmem [resolvable:$true] %s398_s27 }
  0x3f   : > { %v263_v54 = vsel %vm246_vm1, 0.1, %v752_v2  ;;  %s664_s30 = scalar_lea.vmem %s399_s27, 16  ;;  %s754_s12 = smov [#allocation8]  }
  0x40   : > { %v238_v8 = vmax.f32 %v234_v6, %v515_v5  ;;  %v252_v34 = vsub.s32 %v249_v28, %v251_v29  ;;  %v286_v55 = vsel %vm275_vm2, 0.2, %v263_v54  ;;  %v361_v5 = vsub.s32 0, %v251_v29  ;;  %p665_p8 = scmp.ne.s32.totalorder %s399_s27, %s664_s30  ;;  %s668_s4 = sshll.u32 %s754_s12, 4  ;;  %s669_s4 = int_to_ptr.vmem [resolvable:$false] %s668_s4 }
  0x41   : > { %v301_v56 = vsel %vm297_vm3, 0.3, %v286_v55  ;;  %v365_v6 = vsub.s32 1, %v251_v29  ;;  %s670_s6 = scalar_lea.vmem %s669_s4, 32  ;;  %p671_p13 = scmp.lt.s32.totalorder %s399_s27, %s669_s4 }
  0x42   : > { %v242_v9 = vmax.f32 %v238_v8, %v516_v7  ;;  %v253_v36 = vrot.slane %v228_v3, %v252_v34  ;;  %v316_v57 = vsel %vm312_vm4, 0.4, %v301_v56  ;;  %p666_p0 = pnand %p665_p8, %p821_p9  ;;  %p672_p5 = scmp.lt.s32.totalorder %s670_s6, %s664_s30 }
  0x44   : > { %v243_v10 = vsub.f32 %v228_v3, %v242_v9  ;;  %v265_v11 = vrot.slane %v242_v9, 7  ;;  %v287_v12 = vrot.slane %v242_v9, 6  ;;  %v302_v13 = vrot.slane %v242_v9, 5  ;;  %p667_p3 = pneg %p666_p0  ;;  %p673_p12 = por %p672_p5, %p671_p13 }
  0x45   : > { %v276_v38 = vcombine.high %v253_v36, %v253_v36  ;;  %v260_v39 = vrot.slane %v253_v36, %v252_v34  ;;  %v344_v63 = vld [vmem:[#allocation2] sm:$0x3] }
  0x46   : > { %v244_v14 = vmul.f32 1.442695, %v243_v10  ;;  %v267_v15 = vsub.f32 %v228_v3, %v265_v11  ;;  %v289_v16 = vsub.f32 %v228_v3, %v287_v12  ;;  %v304_v17 = vsub.f32 %v228_v3, %v302_v13  ;;  %p674_p6 = pnand %p673_p12, %p667_p3 }
  0x47   : > { %v283_v40 = vrot.slane %v276_v38, %v252_v34  ;;  %v262_v41 = vsel %vm246_vm1, %v260_v39, 0.0  ;;  %v298_v42 = vcombine.high %v260_v39, %v260_v39 }
  0x48   : > { %v268_v18 = vmul.f32 1.442695, %v267_v15  ;;  %v290_v19 = vmul.f32 1.442695, %v289_v16  ;;  %596 = vpow2.f32 %v244_v14  ;;  %v305_v20 = vmul.f32 1.442695, %v304_v17 }
  0x49   : > { %v285_v44 = vsel %vm275_vm2, %v283_v40, %v262_v41  ;;  %v313_v46 = vcombine.high %v283_v40, %v283_v40 }
  0x4a   : > { %598 = vpow2.f32 %v268_v18  ;;  %v300_v47 = vsel %vm297_vm3, %v298_v42, %v285_v44  ;;  %v355_v18 = vand.u32 127, %v223_v0 }
  0x4b   : > { %600 = vpow2.f32 %v290_v19  ;;  %v315_v50 = vsel %vm312_vm4, %v313_v46, %v300_v47 }
  0x4c   : > { %602 = vpow2.f32 %v305_v20  ;;  %vm356_vm6 = vcmp.eq.s32.totalorder %v355_v18, 0 }
  0x55   : > { %v597_v23 = vpop.eup %596 }
  0x57   : > { %v599_v24 = vpop.eup %598 }
  0x58   : > { %v601_v25 = vpop.eup %600  ;;  %v517_v26 = vrot.slane %v599_v24, 9 }
  0x59   : > { %v603_v27 = vpop.eup %602  ;;  %v518_v30 = vrot.slane %v601_v25, 10 }
  0x5a   : > { %v274_v31 = vadd.f32 %v597_v23, %v517_v26  ;;  %v519_v32 = vrot.slane %v603_v27, 11 }
  0x5c   : > { %v296_v33 = vadd.f32 %v518_v30, %v274_v31 }
  0x5e   : > { %v311_v35 = vadd.f32 %v519_v32, %v296_v33 }
  0x60   : > { %604 = vlog2.f32 %v311_v35 }
  0x6d   : > { %v605_v43 = vpop.eup %604 }
  0x6e   : > { %v318_v45 = vmul.f32 0.6931472, %v605_v43 }
  0x70   : > { %v319_v48 = vadd.f32 %v318_v45, %v242_v9 }
  0x72   : > { %v327_v49 = vrot.slane %v319_v48, %v252_v34 }
  0x74   : > { %v334_v51 = vrot.slane %v327_v49, %v252_v34 }
  0x76   : > { %v336_v52 = vsub.f32 %v315_v50, %v334_v51 }
  0x78   : > { %v337_v53 = vmul.f32 1.442695, %v336_v52  ;;  %v339_v59 = vmul.f32 %v336_v52, %v316_v57 }
  0x7a   : > { %606 = vpow2.f32 %v337_v53 }
  0x87   : > { %v607_v58 = vpop.eup %606 }
  0x88   : > { %v340_v60 = vsub.f32 1.0, %v607_v58 }
  0x8a   : > { %v341_v61 = vmul.f32 %v340_v60, %v340_v60 }
  0x8c   : > { %v342_v62 = vmul.f32 %v341_v61, %v339_v59 }
  0x8e   : > { %v343_v3 = vsub.f32 0.0, %v342_v62 }
  0x90   : > { %v345_v4 = vadd.f32 %v344_v63, %v343_v3 }
  0x92   : > { %350 = vst.msk [vmem:[#allocation2] sm:$0x3] %vm897_vm0, %v345_v4 }
  0x99   : > { %v357_v7 = vld [vmem:[#allocation2] sm:$0x3] }
  0x9a   : > { %v362_v2 = vrot.slane %v357_v7, %v361_v5  ;;  %v366_v8 = vrot.slane %v357_v7, %v365_v6 }
  0x9c   : > { %v370_v9 = vsel %vm369_vm5, %v362_v2, 0.0  ;;  %v371_v10 = vsel %vm369_vm5, %v366_v8, 0.0 }
  0x9d   : > { %v372_v11 = vadd.f32 %v371_v10, %v370_v9 }
  0x9f   : > { %373 = vadd.xlane.f32.xlu0 %v372_v11 }
 0x128   : > { %v374_v12 = vpop.xlane.xlu0 %373 }
 0x129   : > { %v375_v13 = vrot.slane %v374_v12, 4 }
 0x12b   : > { %v376_v14 = vadd.f32 %v375_v13, %v374_v12 }
 0x12d   : > { %v377_v15 = vrot.slane %v376_v14, 2 }
 0x12f   : > { %v378_v16 = vadd.f32 %v377_v15, %v376_v14 }
 0x131   : > { %v379_v1 = vrot.slane %v378_v16, 1 }
 0x133   : > { %v380_v17 = vadd.f32 %v379_v1, %v378_v16 }
 0x135   : > { %525 = vpush %v380_v17 }
 0x166   : > { %s526_s28 = spop %525 }
 0x167   : > { %v382_v19 = vstv %s526_s28 }
 0x168   : > { %v383_v20 = vsel %vm356_vm6, %v382_v19, 0.0 }
 0x169   : > { %384 = vst [vmem:[%s216_s26] sm:$0x1] %v383_v20 }
 0x16a   : > { %677 = shalt.err (!%p674_p6)
}
 0x16b   : > { %s678_s15 = scalar_lea.hbm %s919_s7, 16  ;;  %s682_s19 = scalar_lea.hbm %s963_s2, 32 }
 0x16c   : > { %p679_p7 = scmp.ne.s32.totalorder %s919_s7, %s678_s15  ;;  %p683_p4 = scmp.lt.s32.totalorder %s919_s7, %s963_s2 }
 0x16d   : > { %p684_p10 = scmp.lt.s32.totalorder %s682_s19, %s678_s15 }
 0x16e   : > { %p680_p1 = pnand %p679_p7, %p821_p9 }
 0x16f   : > { %p685_p8 = por %p684_p10, %p683_p4 }
 0x170   : > { %p681_p2 = pneg %p680_p1 }
 0x172   : > { %p686_p0 = pnand %p685_p8, %p681_p2 }
 0x174   : > { %689 = shalt.err (!%p686_p0)
}
 0x175   : > { %531 = dma.vmem_to_hbm [thread:$0]  (%p821_p9), %s399_s27, 16, %s919_s7, %s386_s8  }
 0x176 PF: > { %s410_s20 = sand.u32 1, %s728_s9   ;;  %p972_p3 = scmp.ge.s32.totalorder %s748_s14, 2 }
 0x177   : > { %s411_s21 = scalar_lea.sflag [#allocation5], %s410_s20 }
 0x178   : > { %p541_p13 = pnand %p972_p3, %p828_p11 }
 0x17a   : > { %p542_p5 = pneg %p541_p13 }
 0x17c   : > { %723 = dma.done.wait (%p542_p5), %s411_s21, 16  }
 0x17d   : > { %725 = vsyncadd (%p542_p5), %s411_s21, 4294967280  ;;  %s21_s14 = sadd.s32 1, %s748_s14   ;;  %s973_s9 = smov %s732_s10 }
 0x17e   : > { %p18_p12 = scmp.ge.s32.totalorder %s21_s14, 4   ;;  %s974_s10 = smov %s736_s11 }
 0x17f   : > { %s975_s11 = smov %s826_s23  ;;  %s976_s12 = smov %s744_s13 }
 0x180   : > { %s977_s13 = smov %s979_s17  ;;  %20 = sbr.rel (!%p18_p12) target bundleno = 8 (0x8), region = 94 }
 0x185   :  { %415 = vsyncpa [#allocation4], 1 }
 0x186   :  { %417 = vsyncpa [#allocation4 + $0x1], 1 }
 0x187   :  { %418 = vsyncpa [#allocation7], 1 }
 0x188   :  { %420 = vsyncpa [#allocation7 + $0x1], 1 }
 0x189   :  { %421 = vsyncpa [#allocation5], 1 }
 0x18a   :  { %423 = vsyncpa [#allocation5 + $0x1], 1 }

</bundles_post_ra>
